<compile_context>
chip_gen: v6e
topology: v6e:2x2x1
jax: 0.10.0
libtpu: 0.0.40
codegen_flags: <defaults>
</compile_context>

<pallas_src>
import jax
import jax.numpy as jnp
from jax.experimental import pallas as pl
from jax.experimental.pallas import tpu as pltpu

INPUT_SIZE = 784
HIDDEN_SIZE = 128
NUM_CLASSES = 10
MAX_TILE_B = 2048      # batch tile cap: keeps double-buffered f32 x ~13 MiB


def _round_up(n, m):
    return ((n + m - 1) // m) * m


def _choose_tile_b(B, x_dtype):
    """Pick the batch tile.

    Small batches: one sublane-aligned tile (grid of 1).
    Larger batches: aim for >= 4 grid steps (v7x megacore sharding + pipeline
    depth) while amortizing the fixed per-step overhead, capped at MAX_TILE_B.
    """
    sub = 16 if x_dtype == jnp.bfloat16 else 8   # native sublane tile per dtype
    if B <= 256:
        return _round_up(B, sub)
    tile = _round_up(-(-B // 4), 256)            # ~B/4, 256-row aligned
    return min(MAX_TILE_B, tile)


def mlp_kernel(x_ref, w1_ref, b1_ref, w2_ref, b2_ref, o_ref):
    # In-kernel bf16 casts (VPU, hidden under the x DMA); f32 MXU accumulation.
    x = x_ref[...].astype(jnp.bfloat16)
    w1 = w1_ref[...].astype(jnp.bfloat16)
    h = jnp.dot(x, w1, preferred_element_type=jnp.float32)      # fc1 on the MXU
    h = jnp.maximum(h + b1_ref[...], 0.0)                       # bias + ReLU (VPU)
    w2 = w2_ref[...].astype(jnp.bfloat16)
    out = jnp.dot(h.astype(jnp.bfloat16), w2,
                  preferred_element_type=jnp.float32)           # fc2 on the MXU
    o_ref[...] = (out + b2_ref[...]).astype(o_ref.dtype)        # masked 10-lane store


@jax.jit
def neural_net_forward(x, w1, b1, w2, b2):
    """x: (B, 784). w1: (784, 128), b1: (1, 128), w2: (128, 10), b2: (1, 10).

    Returns (B, 10) float32 logits, matching the PyTorch module's forward
    (up to bf16 MXU-operand rounding; accumulation is f32).
    """
    B = x.shape[0]
    tile_b = _choose_tile_b(B, x.dtype)
    grid = (pl.cdiv(B, tile_b),)   # partial trailing block handled by Pallas

    b1_f = b1.astype(jnp.float32).reshape(1, HIDDEN_SIZE)
    b2_f = b2.astype(jnp.float32).reshape(1, NUM_CLASSES)

    return pl.pallas_call(
        mlp_kernel,
        out_shape=jax.ShapeDtypeStruct((B, NUM_CLASSES), jnp.float32),
        grid=grid,
        in_specs=[
            pl.BlockSpec((tile_b, INPUT_SIZE), lambda i: (i, 0)),        # x: batch-tiled
            pl.BlockSpec((INPUT_SIZE, HIDDEN_SIZE), lambda i: (0, 0)),   # w1 resident
            pl.BlockSpec((1, HIDDEN_SIZE), lambda i: (0, 0)),            # b1 resident
            pl.BlockSpec((HIDDEN_SIZE, NUM_CLASSES), lambda i: (0, 0)),  # w2 resident
            pl.BlockSpec((1, NUM_CLASSES), lambda i: (0, 0)),            # b2 resident
        ],
        out_specs=pl.BlockSpec((tile_b, NUM_CLASSES), lambda i: (i, 0)),
        compiler_params=pltpu.CompilerParams(
            dimension_semantics=("parallel",),   # v7x: shard batch tiles over 2 TCs
            vmem_limit_bytes=32 << 20,           # headroom on v7x's 64 MiB VMEM
        ),
    )(x, w1, b1_f, w2, b2_f)


def init_params(key):
    """Deterministic init mirroring nn.Linear's uniform(-1/sqrt(fan_in), 1/sqrt(fan_in))."""
    k1, k2, k3, k4 = jax.random.split(key, 4)
    bound1 = 1.0 / jnp.sqrt(INPUT_SIZE)
    bound2 = 1.0 / jnp.sqrt(HIDDEN_SIZE)
    # Stored as (in, out) = transpose of PyTorch's (out, in) weight layout.
    w1 = jax.random.uniform(k1, (INPUT_SIZE, HIDDEN_SIZE), jnp.float32, -bound1, bound1)
    b1 = jax.random.uniform(k2, (1, HIDDEN_SIZE), jnp.float32, -bound1, bound1)
    w2 = jax.random.uniform(k3, (HIDDEN_SIZE, NUM_CLASSES), jnp.float32, -bound2, bound2)
    b2 = jax.random.uniform(k4, (1, NUM_CLASSES), jnp.float32, -bound2, bound2)
    return w1, b1, w2, b2


if __name__ == "__main__":
    key = jax.random.PRNGKey(0)
    kx, kp = jax.random.split(key)
    B = 8
    x = jax.random.normal(kx, (B, INPUT_SIZE), jnp.float32)
    w1, b1, w2, b2 = init_params(kp)

    out = neural_net_forward(x, w1, b1, w2, b2)
    jax.block_until_ready(out)
    assert out.shape == (B, NUM_CLASSES)

    # Reference in plain JAX mirroring the kernel's bf16 operand casts
    # (f32 accumulation in both), so only accumulation-order error remains.
    xb = x.astype(jnp.bfloat16).astype(jnp.float32)
    w1f = w1.astype(jnp.bfloat16).astype(jnp.float32)
    w2f = w2.astype(jnp.bfloat16).astype(jnp.float32)
    h = jnp.maximum(xb @ w1f + b1, 0.0)
    ref = h.astype(jnp.bfloat16).astype(jnp.float32) @ w2f + b2
    assert jnp.allclose(out, ref, atol=5e-3, rtol=5e-3)

    # Loose sanity check against the full-precision math of the PyTorch module.
    ref_f32 = jnp.maximum(x @ w1 + b1, 0.0) @ w2 + b2
    assert jnp.allclose(out, ref_f32, atol=5e-2, rtol=5e-2)

    print("KERNEL_OK")
</pallas_src>

<mosaic_0001>
module attributes {stable_mosaic.version = 11 : i64} {
  func.func @mlp_kernel(%arg0: i32, %arg1: memref<8x784xf32, #tpu.memory_space<vmem>>, %arg2: memref<784x128xf32, #tpu.memory_space<vmem>>, %arg3: memref<1x128xf32, #tpu.memory_space<vmem>>, %arg4: memref<128x10xf32, #tpu.memory_space<vmem>>, %arg5: memref<1x10xf32, #tpu.memory_space<vmem>>, %arg6: memref<8x10xf32, #tpu.memory_space<vmem>>) attributes {dimension_semantics = [#tpu.dimension_semantics<parallel>], iteration_bounds = array<i64: 1>, scalar_prefetch = 0 : i64, scratch_operands = 0 : i64, tpu.core_type = #tpu.core_type<tc>, window_params = [{transform_indices = @transform_0, window_bounds = array<i64: 8, 784>}, {pipeline_mode = #tpu.pipeline_mode<synchronous>, transform_indices = @transform_1, window_bounds = array<i64: 784, 128>}, {pipeline_mode = #tpu.pipeline_mode<synchronous>, transform_indices = @transform_2, window_bounds = array<i64: 1, 128>}, {pipeline_mode = #tpu.pipeline_mode<synchronous>, transform_indices = @transform_3, window_bounds = array<i64: 128, 10>}, {pipeline_mode = #tpu.pipeline_mode<synchronous>, transform_indices = @transform_4, window_bounds = array<i64: 1, 10>}, {transform_indices = @transform_5, window_bounds = array<i64: 8, 10>}]} {
    %c0 = arith.constant 0 : index
    %c0_0 = arith.constant 0 : index
    %0 = vector.load %arg1[%c0, %c0_0] : memref<8x784xf32, #tpu.memory_space<vmem>>, vector<8x784xf32>
    %1 = arith.truncf %0 : vector<8x784xf32> to vector<8x784xbf16>
    %c0_1 = arith.constant 0 : index
    %c0_2 = arith.constant 0 : index
    %2 = vector.load %arg2[%c0_1, %c0_2] : memref<784x128xf32, #tpu.memory_space<vmem>>, vector<784x128xf32>
    %3 = arith.truncf %2 : vector<784x128xf32> to vector<784x128xbf16>
    %cst = arith.constant dense<0.000000e+00> : vector<8x128xf32>
    %4 = tpu.matmul %1, %3, %cst {dimension_numbers = #tpu.dot_dimension_numbers<[1], [0], [0], [1], [0, 0, 1, 1], [], []>} : vector<8x784xbf16>, vector<784x128xbf16>, vector<8x128xf32> -> vector<8x128xf32>
    %c0_3 = arith.constant 0 : index
    %c0_4 = arith.constant 0 : index
    %5 = vector.load %arg3[%c0_3, %c0_4] : memref<1x128xf32, #tpu.memory_space<vmem>>, vector<1x128xf32>
    %6 = vector.broadcast %5 : vector<1x128xf32> to vector<8x128xf32>
    %7 = arith.addf %4, %6 : vector<8x128xf32>
    %cst_5 = arith.constant 0.000000e+00 : f32
    %8 = vector.broadcast %cst_5 : f32 to vector<8x128xf32>
    %9 = arith.maximumf %7, %8 : vector<8x128xf32>
    %c0_6 = arith.constant 0 : index
    %c0_7 = arith.constant 0 : index
    %10 = vector.load %arg4[%c0_6, %c0_7] : memref<128x10xf32, #tpu.memory_space<vmem>>, vector<128x10xf32>
    %11 = arith.truncf %10 : vector<128x10xf32> to vector<128x10xbf16>
    %12 = arith.truncf %9 : vector<8x128xf32> to vector<8x128xbf16>
    %cst_8 = arith.constant dense<0.000000e+00> : vector<8x10xf32>
    %13 = tpu.matmul %12, %11, %cst_8 {dimension_numbers = #tpu.dot_dimension_numbers<[1], [0], [0], [1], [0, 0, 1, 1], [], []>} : vector<8x128xbf16>, vector<128x10xbf16>, vector<8x10xf32> -> vector<8x10xf32>
    %c0_9 = arith.constant 0 : index
    %c0_10 = arith.constant 0 : index
    %14 = vector.load %arg5[%c0_9, %c0_10] : memref<1x10xf32, #tpu.memory_space<vmem>>, vector<1x10xf32>
    %15 = vector.broadcast %14 : vector<1x10xf32> to vector<8x10xf32>
    %16 = arith.addf %13, %15 : vector<8x10xf32>
    %c0_11 = arith.constant 0 : index
    %c0_12 = arith.constant 0 : index
    %17 = vector.load %arg6[%c0_11, %c0_12] : memref<8x10xf32, #tpu.memory_space<vmem>>, vector<8x10xf32>
    tpu.vector_store %arg6[%c0_11, %c0_12], %16 {strides = array<i32>} : memref<8x10xf32, #tpu.memory_space<vmem>>, vector<8x10xf32>,
    return
  }
  func.func @transform_0(%arg0: i32) -> (i32, i32) {
    %c0_i32 = arith.constant 0 : i32
    %c0_i32_0 = arith.constant 0 : i32
    return %arg0, %c0_i32 : i32, i32
  }
  func.func @transform_1(%arg0: i32) -> (i32, i32) {
    %c0_i32 = arith.constant 0 : i32
    %c0_i32_0 = arith.constant 0 : i32
    %c0_i32_1 = arith.constant 0 : i32
    return %c0_i32, %c0_i32_0 : i32, i32
  }
  func.func @transform_2(%arg0: i32) -> (i32, i32) {
    %c0_i32 = arith.constant 0 : i32
    %c0_i32_0 = arith.constant 0 : i32
    %c0_i32_1 = arith.constant 0 : i32
    return %c0_i32, %c0_i32_0 : i32, i32
  }
  func.func @transform_3(%arg0: i32) -> (i32, i32) {
    %c0_i32 = arith.constant 0 : i32
    %c0_i32_0 = arith.constant 0 : i32
    %c0_i32_1 = arith.constant 0 : i32
    return %c0_i32, %c0_i32_0 : i32, i32
  }
  func.func @transform_4(%arg0: i32) -> (i32, i32) {
    %c0_i32 = arith.constant 0 : i32
    %c0_i32_0 = arith.constant 0 : i32
    %c0_i32_1 = arith.constant 0 : i32
    return %c0_i32, %c0_i32_0 : i32, i32
  }
  func.func @transform_5(%arg0: i32) -> (i32, i32) {
    %c0_i32 = arith.constant 0 : i32
    %c0_i32_0 = arith.constant 0 : i32
    return %arg0, %c0_i32 : i32, i32
  }
}

</mosaic_0001>

<bundles_post_ra>
// kernel: neural_net_forward.1
= control target key start
LH: loop header
LB: loop body
LE: loop exit
PB: predicated region body
PF: predicated region fallthrough
CT: control target
= control target key end

     0   :  { %10 = vsyncpa [#allocation3], 0  ;;  %s744_s0 = inlined_call_operand.vmem [shape: f32[8,784], index: 0, kind: input, shape index: {}]   ;;  %s745_s1 = inlined_call_operand.hbm [shape: f32[784,128], index: 1, kind: input, shape index: {}]   ;;  %s746_s2 = inlined_call_operand.vmem [shape: f32[1,128], index: 2, kind: input, shape index: {}]   ;;  %s747_s3 = inlined_call_operand.vmem [shape: f32[128,10], index: 3, kind: input, shape index: {}]   ;;  %s748_s4 = inlined_call_operand.vmem [shape: f32[1,10], index: 4, kind: input, shape index: {}]   ;;  %s749_s5 = inlined_call_operand.hbm [shape: f32[8,10], index: 5, kind: output, shape index: {}]  }
   0x1   :  { %11 = vsyncpa [#allocation4], 0  ;;  %s614_s18 = smov [#allocation2]  }
   0x2   :  { %s19_s19 = sshll.u32 %s614_s18, 4  ;;  %s20_s19 = int_to_ptr.vmem [resolvable:$true] %s19_s19 }
   0x3   :  { %s578_s20 = scalar_lea.vmem %s20_s19, 12544  ;;  %p583_p1 = scmp.lt.s32.totalorder %s20_s19, %s20_s19 }
   0x4   :  { %p579_p0 = scmp.ne.s32.totalorder %s20_s19, %s578_s20  ;;  %p584_p2 = scmp.lt.s32.totalorder %s578_s20, %s578_s20 }
   0x6   :  { %p585_p3 = por %p584_p2, %p583_p1 }
   0x8   :  { %p586_p4 = pnand %p585_p3, %p579_p0 }
   0xa   :  { %589 = shalt.err (!%p586_p4)
}
   0xb   :  { %s615_s21 = smov 128   ;;  %s616_s22 = smov 8  }
   0xc   :  { %25 = dma.hbm_to_vmem [thread:$0]  %s745_s1, 12544, %s20_s19, [#allocation3], %s615_s21, %s615_s21, %s616_s22  }
   0xd   :  { %610 = dma.done.wait [#allocation3], 12544  }
   0xe   :  { %611 = vsyncadd [#allocation3], 4294954752  ;;  %v80_v0 = vld [vmem:[#allocation2 + $0xf0] sm:$0xff]  ;;  %v81_v1 = vld [vmem:[#allocation2 + $0xf8] sm:$0xff]  ;;  %vm618_vm0 = vmmov 0   ;;  %vm204_vm1 = vcmask 130048  }
   0xf   :  { %v64_v2 = vld [vmem:[#allocation2 + $0x70] sm:$0xff]  ;;  %v163_v3 = vpack.c.bf16 %v81_v1, %v80_v0  ;;  %v65_v4 = vld [vmem:[#allocation2 + $0x78] sm:$0xff]  ;;  %v78_v11 = vld [vmem:[#allocation2 + $0xe0] sm:$0xff]  ;;  %vm441_vm2 = vcmask 80896  }
  0x10   :  { %v112_v5 = vld [vmem:[#allocation2 + $0x1f0] sm:$0xff]  ;;  %v113_v6 = vld [vmem:[#allocation2 + $0x1f8] sm:$0xff]  ;;  %v155_v7 = vpack.c.bf16 %v65_v4, %v64_v2  ;;  %v79_v13 = vld [vmem:[#allocation2 + $0xe8] sm:$0xff] }
  0x11   :  { %v179_v8 = vpack.c.bf16 %v113_v6, %v112_v5  ;;  %v96_v9 = vld [vmem:[#allocation2 + $0x170] sm:$0xff]  ;;  %v97_v10 = vld [vmem:[#allocation2 + $0x178] sm:$0xff]  ;;  %461 = vmatprep.subr.bf16.mxu0 %v163_v3  ;;  %v62_v14 = vld [vmem:[#allocation2 + $0x60] sm:$0xff]  ;;  %v162_v16 = vpack.c.bf16 %v79_v13, %v78_v11 }
  0x12   :  { %v171_v12 = vpack.c.bf16 %v97_v10, %v96_v9  ;;  %v63_v15 = vld [vmem:[#allocation2 + $0x68] sm:$0xff]  ;;  %462 = vmatpush3.bf16.msra.mxu0 %v155_v7  ;;  %v110_v18 = vld [vmem:[#allocation2 + $0x1e0] sm:$0xff]  ;;  %v76_v23 = vld [vmem:[#allocation2 + $0xd0] sm:$0xff] }
  0x13   :  { %483 = vmatprep.subr.bf16.mxu1 %v179_v8  ;;  %v154_v17 = vpack.c.bf16 %v63_v15, %v62_v14  ;;  %v111_v19 = vld [vmem:[#allocation2 + $0x1e8] sm:$0xff]  ;;  %v94_v20 = vld [vmem:[#allocation2 + $0x160] sm:$0xff]  ;;  %v77_v24 = vld [vmem:[#allocation2 + $0xd8] sm:$0xff]  ;;  %463 = vmatprep.subr.bf16.mxu0 %v162_v16 }
  0x14   :  { %484 = vmatpush3.bf16.msra.mxu1 %v171_v12  ;;  %v178_v21 = vpack.c.bf16 %v111_v19, %v110_v18  ;;  %v95_v22 = vld [vmem:[#allocation2 + $0x168] sm:$0xff]  ;;  %v161_v26 = vpack.c.bf16 %v77_v24, %v76_v23  ;;  %v60_v27 = vld [vmem:[#allocation2 + $0x50] sm:$0xff]  ;;  %v61_v28 = vld [vmem:[#allocation2 + $0x58] sm:$0xff] }
  0x15   :  { %v170_v25 = vpack.c.bf16 %v95_v22, %v94_v20  ;;  %v108_v29 = vld [vmem:[#allocation2 + $0x1d0] sm:$0xff]  ;;  %v109_v30 = vld [vmem:[#allocation2 + $0x1d8] sm:$0xff]  ;;  %v153_v33 = vpack.c.bf16 %v61_v28, %v60_v27  ;;  %v74_v35 = vld [vmem:[#allocation2 + $0xc0] sm:$0xff] }
  0x16   :  { %485 = vmatprep.subr.bf16.mxu1 %v178_v21  ;;  %v92_v31 = vld [vmem:[#allocation2 + $0x150] sm:$0xff]  ;;  %v93_v32 = vld [vmem:[#allocation2 + $0x158] sm:$0xff]  ;;  %464 = vmatpush3.bf16.msra.mxu0 %v154_v17  ;;  %v177_v34 = vpack.c.bf16 %v109_v30, %v108_v29  ;;  %v75_v36 = vld [vmem:[#allocation2 + $0xc8] sm:$0xff] }
  0x17   :  { %v58_v37 = vld [vmem:[#allocation2 + $0x40] sm:$0xff]  ;;  %465 = vmatprep.subr.bf16.mxu0 %v161_v26  ;;  %v169_v38 = vpack.c.bf16 %v93_v32, %v92_v31  ;;  %v160_v39 = vpack.c.bf16 %v75_v36, %v74_v35  ;;  %v59_v40 = vld [vmem:[#allocation2 + $0x48] sm:$0xff]  ;;  %v72_v46 = vld [vmem:[#allocation2 + $0xb0] sm:$0xff] }
  0x18   :  { %486 = vmatpush3.bf16.msra.mxu1 %v170_v25  ;;  %v106_v41 = vld [vmem:[#allocation2 + $0x1c0] sm:$0xff]  ;;  %v107_v42 = vld [vmem:[#allocation2 + $0x1c8] sm:$0xff]  ;;  %v73_v47 = vld [vmem:[#allocation2 + $0xb8] sm:$0xff]  ;;  %v152_v48 = vpack.c.bf16 %v59_v40, %v58_v37 }
  0x19   :  { %487 = vmatprep.subr.bf16.mxu1 %v177_v34  ;;  %v176_v43 = vpack.c.bf16 %v107_v42, %v106_v41  ;;  %v90_v44 = vld [vmem:[#allocation2 + $0x140] sm:$0xff]  ;;  %v91_v45 = vld [vmem:[#allocation2 + $0x148] sm:$0xff]  ;;  %v104_v49 = vld [vmem:[#allocation2 + $0x1b0] sm:$0xff]  ;;  %v159_v52 = vpack.c.bf16 %v73_v47, %v72_v46 }
  0x1a   :  { %466 = vmatpush3.bf16.msra.mxu0 %v153_v33  ;;  %v105_v50 = vld [vmem:[#allocation2 + $0x1b8] sm:$0xff]  ;;  %v168_v51 = vpack.c.bf16 %v91_v45, %v90_v44  ;;  %v56_v53 = vld [vmem:[#allocation2 + $0x30] sm:$0xff]  ;;  %v70_v58 = vld [vmem:[#allocation2 + $0xa0] sm:$0xff] }
  0x1b   :  { %467 = vmatprep.subr.bf16.mxu0 %v160_v39  ;;  %v57_v54 = vld [vmem:[#allocation2 + $0x38] sm:$0xff]  ;;  %v88_v55 = vld [vmem:[#allocation2 + $0x130] sm:$0xff]  ;;  %v175_v56 = vpack.c.bf16 %v105_v50, %v104_v49  ;;  %v71_v59 = vld [vmem:[#allocation2 + $0xa8] sm:$0xff] }
  0x1c   :  { %488 = vmatpush3.bf16.msra.mxu1 %v169_v38  ;;  %v89_v57 = vld [vmem:[#allocation2 + $0x138] sm:$0xff]  ;;  %v102_v60 = vld [vmem:[#allocation2 + $0x1a0] sm:$0xff]  ;;  %v103_v61 = vld [vmem:[#allocation2 + $0x1a8] sm:$0xff]  ;;  %v151_v62 = vpack.c.bf16 %v57_v54, %v56_v53  ;;  %v158_v0 = vpack.c.bf16 %v71_v59, %v70_v58 }
  0x1d   :  { %489 = vmatprep.subr.bf16.mxu1 %v176_v43  ;;  %v167_v63 = vpack.c.bf16 %v89_v57, %v88_v55  ;;  %v54_v1 = vld [vmem:[#allocation2 + $0x20] sm:$0xff]  ;;  %v55_v2 = vld [vmem:[#allocation2 + $0x28] sm:$0xff]  ;;  %v174_v4 = vpack.c.bf16 %v103_v61, %v102_v60  ;;  %v68_v6 = vld [vmem:[#allocation2 + $0x90] sm:$0xff]  ;;  %v617_v55 = vmov 0.0  }
  0x1e   :  { %468 = vmatpush3.bf16.msra.mxu0 %v152_v48  ;;  %v86_v3 = vld [vmem:[#allocation2 + $0x120] sm:$0xff]  ;;  %v87_v5 = vld [vmem:[#allocation2 + $0x128] sm:$0xff]  ;;  %v69_v7 = vld [vmem:[#allocation2 + $0x98] sm:$0xff]  ;;  %v150_v10 = vpack.c.bf16 %v55_v2, %v54_v1 }
  0x1f   :  { %469 = vmatprep.subr.bf16.mxu0 %v159_v52  ;;  %v100_v8 = vld [vmem:[#allocation2 + $0x190] sm:$0xff]  ;;  %v101_v9 = vld [vmem:[#allocation2 + $0x198] sm:$0xff]  ;;  %v37_v12 = vld [vmem:[%s744_s0 + $0x8] sm:$0xff]  ;;  %v166_v13 = vpack.c.bf16 %v87_v5, %v86_v3  ;;  %v157_v14 = vpack.c.bf16 %v69_v7, %v68_v6 }
  0x20   :  { %490 = vmatpush3.bf16.msra.mxu1 %v168_v51  ;;  %v52_v11 = vld [vmem:[#allocation2 + $0x10] sm:$0xff]  ;;  %v53_v15 = vld [vmem:[#allocation2 + $0x18] sm:$0xff]  ;;  %v44_v18 = vpack.c.bf16 %v37_v12, %v37_v12  ;;  %v173_v19 = vpack.c.bf16 %v101_v9, %v100_v8  ;;  %v66_v20 = vld [vmem:[#allocation2 + $0x80] sm:$0xff] }
  0x21   :  { %491 = vmatprep.subr.bf16.mxu1 %v175_v56  ;;  %v84_v16 = vld [vmem:[#allocation2 + $0x110] sm:$0xff]  ;;  %v85_v17 = vld [vmem:[#allocation2 + $0x118] sm:$0xff]  ;;  %v67_v21 = vld [vmem:[#allocation2 + $0x88] sm:$0xff]  ;;  %v149_v26 = vpack.c.bf16 %v53_v15, %v52_v11 }
  0x22   :  { %470 = vmatpush3.bf16.msra.mxu0 %v151_v62  ;;  %v39_v22 = vld [vmem:[%s744_s0 + $0x18] sm:$0xff]  ;;  %v98_v23 = vld [vmem:[#allocation2 + $0x180] sm:$0xff]  ;;  %v99_v24 = vld [vmem:[#allocation2 + $0x188] sm:$0xff]  ;;  %240 = vmatprep.mubr.bf16.mxu0 %v44_v18  ;;  %v165_v27 = vpack.c.bf16 %v85_v17, %v84_v16  ;;  %v156_v28 = vpack.c.bf16 %v67_v21, %v66_v20 }
  0x23   :  { %471 = vmatprep.subr.bf16.mxu0 %v158_v0  ;;  %v46_v25 = vpack.c.bf16 %v39_v22, %v39_v22  ;;  %v50_v29 = vld [vmem:[#allocation2] sm:$0xff]  ;;  %v51_v30 = vld [vmem:[#allocation2 + $0x8] sm:$0xff]  ;;  %v172_v32 = vpack.c.bf16 %v99_v24, %v98_v23  ;;  %v144_v34 = vld [vmem:[#allocation2 + $0x2f0] sm:$0xff] }
  0x24   :  { %492 = vmatpush3.bf16.msra.mxu1 %v167_v63  ;;  %v82_v31 = vld [vmem:[#allocation2 + $0x100] sm:$0xff]  ;;  %v83_v33 = vld [vmem:[#allocation2 + $0x108] sm:$0xff]  ;;  %v145_v35 = vld [vmem:[#allocation2 + $0x2f8] sm:$0xff]  ;;  %v148_v36 = vpack.c.bf16 %v51_v30, %v50_v29 }
  0x25   :  { %493 = vmatprep.subr.bf16.mxu1 %v174_v4  ;;  %280 = vmatprep.mubr.bf16.mxu1 %v46_v25  ;;  %v36_v37 = vld [vmem:[%s744_s0] sm:$0xff]  ;;  %v164_v38 = vpack.c.bf16 %v83_v33, %v82_v31  ;;  %v195_v39 = vpack.c.bf16 %v145_v35, %v144_v34  ;;  %v128_v40 = vld [vmem:[#allocation2 + $0x270] sm:$0xff]  ;;  %v129_v41 = vld [vmem:[#allocation2 + $0x278] sm:$0xff] }
  0x26   :  { %472 = vmatpush3.bf16.msra.mxu0 %v150_v10  ;;  %v38_v42 = vld [vmem:[%s744_s0 + $0x10] sm:$0xff]  ;;  %v142_v43 = vld [vmem:[#allocation2 + $0x2e0] sm:$0xff]  ;;  %v143_v44 = vld [vmem:[#allocation2 + $0x2e8] sm:$0xff]  ;;  %v43_v45 = vpack.c.bf16 %v36_v37, %v36_v37  ;;  %v187_v46 = vpack.c.bf16 %v129_v41, %v128_v40 }
  0x27   :  { %473 = vmatprep.subr.bf16.mxu0 %v157_v14  ;;  %v45_v47 = vpack.c.bf16 %v38_v42, %v38_v42  ;;  %v126_v48 = vld [vmem:[#allocation2 + $0x260] sm:$0xff]  ;;  %v194_v49 = vpack.c.bf16 %v143_v44, %v142_v43  ;;  %v127_v50 = vld [vmem:[#allocation2 + $0x268] sm:$0xff]  ;;  %v140_v53 = vld [vmem:[#allocation2 + $0x2d0] sm:$0xff] }
  0x28   :  { %494 = vmatpush3.bf16.msra.mxu1 %v166_v13  ;;  %v146_v51 = vld [vmem:[#allocation2 + $0x300] sm:$0xff]  ;;  %v147_v52 = vld [vmem:[#allocation2 + $0x308] sm:$0xff]  ;;  %v141_v54 = vld [vmem:[#allocation2 + $0x2d8] sm:$0xff]  ;;  %v186_v59 = vpack.c.bf16 %v127_v50, %v126_v48 }
  0x29   :  { %495 = vmatprep.subr.bf16.mxu1 %v173_v19  ;;  %v196_v56 = vpack.c.bf16 %v147_v52, %v146_v51  ;;  %v41_v57 = vld [vmem:[%s744_s0 + $0x28] sm:$0xff]  ;;  %v193_v60 = vpack.c.bf16 %v141_v54, %v140_v53  ;;  %v124_v61 = vld [vmem:[#allocation2 + $0x250] sm:$0xff]  ;;  %v125_v62 = vld [vmem:[#allocation2 + $0x258] sm:$0xff] }
  0x2a   :  { %474 = vmatpush3.bf16.msra.mxu0 %v149_v26  ;;  %v48_v58 = vpack.c.bf16 %v41_v57, %v41_v57  ;;  %v42_v63 = vld [vmem:[%s744_s0 + $0x30] sm:$0xff]  ;;  %v138_v0 = vld [vmem:[#allocation2 + $0x2c0] sm:$0xff]  ;;  %v139_v1 = vld [vmem:[#allocation2 + $0x2c8] sm:$0xff]  ;;  %v185_v2 = vpack.c.bf16 %v125_v62, %v124_v61 }
  0x2b   :  { %475 = vmatprep.subr.bf16.mxu0 %v156_v28  ;;  %v49_v3 = vpack.c.bf16 %v42_v63, %v42_v63  ;;  %v192_v4 = vpack.c.bf16 %v139_v1, %v138_v0  ;;  %v122_v5 = vld [vmem:[#allocation2 + $0x240] sm:$0xff]  ;;  %v123_v6 = vld [vmem:[#allocation2 + $0x248] sm:$0xff]  ;;  %v136_v7 = vld [vmem:[#allocation2 + $0x2b0] sm:$0xff] }
  0x2c   :  { %496 = vmatpush3.bf16.msra.mxu1 %v165_v27  ;;  %v137_v8 = vld [vmem:[#allocation2 + $0x2b8] sm:$0xff]  ;;  %v184_v9 = vpack.c.bf16 %v123_v6, %v122_v5  ;;  %v120_v11 = vld [vmem:[#allocation2 + $0x230] sm:$0xff]  ;;  %v134_v13 = vld [vmem:[#allocation2 + $0x2a0] sm:$0xff] }
  0x2d   :  { %497 = vmatprep.subr.bf16.mxu1 %v172_v32  ;;  %v191_v10 = vpack.c.bf16 %v137_v8, %v136_v7  ;;  %v121_v12 = vld [vmem:[#allocation2 + $0x238] sm:$0xff]  ;;  %v135_v14 = vld [vmem:[#allocation2 + $0x2a8] sm:$0xff]  ;;  %v118_v17 = vld [vmem:[#allocation2 + $0x220] sm:$0xff] }
  0x2e   :  { %476 = vmatpush3.bf16.msra.mxu0 %v148_v36  ;;  %v183_v15 = vpack.c.bf16 %v121_v12, %v120_v11  ;;  %v190_v16 = vpack.c.bf16 %v135_v14, %v134_v13  ;;  %v119_v18 = vld [vmem:[#allocation2 + $0x228] sm:$0xff]  ;;  %v132_v19 = vld [vmem:[#allocation2 + $0x290] sm:$0xff]  ;;  %v133_v20 = vld [vmem:[#allocation2 + $0x298] sm:$0xff] }
  0x2f   :  { %505 = vmatprep.subr.bf16.mxu0 %v195_v39  ;;  %v182_v21 = vpack.c.bf16 %v119_v18, %v118_v17  ;;  %v189_v22 = vpack.c.bf16 %v133_v20, %v132_v19  ;;  %v116_v23 = vld [vmem:[#allocation2 + $0x210] sm:$0xff]  ;;  %v117_v24 = vld [vmem:[#allocation2 + $0x218] sm:$0xff]  ;;  %v130_v25 = vld [vmem:[#allocation2 + $0x280] sm:$0xff] }
  0x30   :  { %498 = vmatpush3.bf16.msra.mxu1 %v164_v38  ;;  %v131_v26 = vld [vmem:[#allocation2 + $0x288] sm:$0xff]  ;;  %v181_v27 = vpack.c.bf16 %v117_v24, %v116_v23  ;;  %v114_v29 = vld [vmem:[#allocation2 + $0x200] sm:$0xff]  ;;  %v383_v34 = vld [vmem:[%s747_s3 + $0x70] sm:$0xff] }
  0x31   :  { %538 = vmatprep.subr.bf16.mxu1 %v617_v55  ;;  %241 = vmatmul.mubr.bf16.vlgmr.msra.gmra.mxu0 %v43_v45  ;;  %v188_v28 = vpack.c.bf16 %v131_v26, %v130_v25  ;;  %v115_v30 = vld [vmem:[#allocation2 + $0x208] sm:$0xff]  ;;  %v40_v32 = vld [vmem:[%s744_s0 + $0x20] sm:$0xff]  ;;  %v384_v35 = vld [vmem:[%s747_s3 + $0x78] sm:$0xff]  ;;  %s619_s0 = smov [#allocation5]  }
  0x32   :  { %506 = vmatpush3.bf16.msra.mxu0 %v187_v46  ;;  %320 = vmatprep.mubr.bf16.mxu0 %v48_v58  ;;  %v180_v31 = vpack.c.bf16 %v115_v30, %v114_v29  ;;  %v47_v33 = vpack.c.bf16 %v40_v32, %v40_v32  ;;  %v381_v36 = vld [vmem:[%s747_s3 + $0x60] sm:$0xff]  ;;  %v392_v37 = vpack.c.bf16 %v384_v35, %v383_v34  ;;  %v382_v38 = vld [vmem:[%s747_s3 + $0x68] sm:$0xff]  ;;  %v379_v40 = vld [vmem:[%s747_s3 + $0x50] sm:$0xff]  ;;  %s449_s21 = sshll.u32 %s619_s0, 4  ;;  %s450_s21 = int_to_ptr.vmem [resolvable:$true] %s449_s21 }
  0x33   :  { %281 = vmatmul.mubr.bf16.vlgmr.msra.gmra.mxu1 %v45_v47  ;;  %507 = vmatprep.subr.bf16.mxu0 %v194_v49  ;;  %v391_v39 = vpack.c.bf16 %v382_v38, %v381_v36  ;;  %v380_v41 = vld [vmem:[%s747_s3 + $0x58] sm:$0xff]  ;;  %v377_v43 = vld [vmem:[%s747_s3 + $0x40] sm:$0xff]  ;;  %v378_v44 = vld [vmem:[%s747_s3 + $0x48] sm:$0xff]  ;;  %p595_p6 = scmp.lt.s32.totalorder %s450_s21, %s450_s21 }
  0x34   :  { %539 = vmatpush3.bf16.msra.mxu1 %v196_v56  ;;  %540 = vmatprep.mubr.msk.bf16.mxu1 %vm618_vm0, %v617_v55  ;;  %v390_v42 = vpack.c.bf16 %v380_v41, %v379_v40  ;;  %v389_v45 = vpack.c.bf16 %v378_v44, %v377_v43  ;;  %v375_v46 = vld [vmem:[%s747_s3 + $0x30] sm:$0xff]  ;;  %v376_v47 = vld [vmem:[%s747_s3 + $0x38] sm:$0xff]  ;;  %v373_v49 = vld [vmem:[%s747_s3 + $0x20] sm:$0xff] }
  0x35   :  { %544 = vmatprep.subr.bf16.mxu1 %v617_v55  ;;  %v388_v48 = vpack.c.bf16 %v376_v47, %v375_v46  ;;  %v374_v50 = vld [vmem:[%s747_s3 + $0x28] sm:$0xff]  ;;  %v371_v52 = vld [vmem:[%s747_s3 + $0x10] sm:$0xff]  ;;  %v372_v53 = vld [vmem:[%s747_s3 + $0x18] sm:$0xff] }
  0x36   :  { %508 = vmatpush3.bf16.msra.mxu0 %v186_v59  ;;  %v387_v51 = vpack.c.bf16 %v374_v50, %v373_v49  ;;  %v386_v54 = vpack.c.bf16 %v372_v53, %v371_v52  ;;  %v369_v56 = vld [vmem:[%s747_s3] sm:$0xff]  ;;  %v370_v57 = vld [vmem:[%s747_s3 + $0x8] sm:$0xff] }
  0x37   :  { %509 = vmatprep.subr.bf16.mxu0 %v193_v60  ;;  %v385_v58 = vpack.c.bf16 %v370_v57, %v369_v56  ;;  %v458_v7 = vld [vmem:[%s746_s2] ss:$0 sm:$0xff]  ;;  %s590_s2 = scalar_lea.vmem %s450_s21, 128 }
  0x38   :  { %v460_v20 = vld [vmem:[%s748_s4] ss:$0 sm:$0xff]  ;;  %p591_p5 = scmp.ne.s32.totalorder %s450_s21, %s590_s2  ;;  %p596_p7 = scmp.lt.s32.totalorder %s590_s2, %s590_s2 }
  0x3a   :  { %510 = vmatpush3.bf16.msra.mxu0 %v185_v2  ;;  %p597_p8 = por %p596_p7, %p595_p6 }
  0x3b   :  { %541 = vmatmul.mubr.msk.bf16.vlgmr.msra.gmra.mxu1 %vm204_vm1, %v49_v3  ;;  %511 = vmatprep.subr.bf16.mxu0 %v192_v4 }
  0x3c   :  { %560 = vmatprep.mubr.msk.bf16.mxu1 %vm618_vm0, %v617_v55  ;;  %545 = vmatpush3.bf16.msra.mxu1 %v392_v37  ;;  %p598_p9 = pnand %p597_p8, %p591_p5 }
  0x3d   :  { %546 = vmatprep.subr.bf16.mxu1 %v617_v55 }
  0x3e   :  { %512 = vmatpush3.bf16.msra.mxu0 %v184_v9 }
  0x3f   :  { %513 = vmatprep.subr.bf16.mxu0 %v191_v10 }
  0x40   :  { %547 = vmatpush3.bf16.msra.mxu1 %v391_v39 }
  0x41   :  { %548 = vmatprep.subr.bf16.mxu1 %v617_v55 }
  0x42   :  { %514 = vmatpush3.bf16.msra.mxu0 %v183_v15 }
  0x43   :  { %515 = vmatprep.subr.bf16.mxu0 %v190_v16 }
  0x44   :  { %549 = vmatpush3.bf16.msra.mxu1 %v390_v42 }
  0x45   :  { %550 = vmatprep.subr.bf16.mxu1 %v617_v55 }
  0x46   :  { %516 = vmatpush3.bf16.msra.mxu0 %v182_v21 }
  0x47   :  { %517 = vmatprep.subr.bf16.mxu0 %v189_v22 }
  0x48   :  { %551 = vmatpush3.bf16.msra.mxu1 %v389_v45 }
  0x49   :  { %552 = vmatprep.subr.bf16.mxu1 %v617_v55 }
  0x4a   :  { %518 = vmatpush3.bf16.msra.mxu0 %v181_v27 }
  0x4b   :  { %519 = vmatprep.subr.bf16.mxu0 %v188_v28 }
  0x4c   :  { %553 = vmatpush3.bf16.msra.mxu1 %v388_v48 }
  0x4d   :  { %554 = vmatprep.subr.bf16.mxu1 %v617_v55 }
  0x4e   :  { %520 = vmatpush3.bf16.msra.mxu0 %v180_v31 }
  0x50   :  { %555 = vmatpush3.bf16.msra.mxu1 %v387_v51 }
  0x51   :  { %321 = vmatmul.mubr.bf16.vlgmr.msra.gmra.mxu0 %v47_v33  ;;  %556 = vmatprep.subr.bf16.mxu1 %v617_v55 }
  0x54   :  { %557 = vmatpush3.bf16.msra.mxu1 %v386_v54 }
  0x55   :  { %558 = vmatprep.subr.bf16.mxu1 %v617_v55 }
  0x58   :  { %559 = vmatpush3.bf16.msra.mxu1 %v385_v58 }
  0xf1   :  { %v477_v59 = vpop.f32.mrf.mxu0 }
  0xf3   :  { %v499_v60 = vpop.f32.mrf.mxu1  ;;  %v478_v61 = vpop.f32.mrf.mxu0 }
  0xf4   :  { %v479_v6 = vadd.f32 %v478_v61, %v477_v59 }
  0xf5   :  { %v500_v62 = vpop.f32.mrf.mxu1  ;;  %v480_v63 = vpop.f32.mrf.mxu0 }
  0xf6   :  { %v243_v8 = vadd.f32 %v479_v6, %v458_v7  ;;  %v501_v9 = vadd.f32 %v500_v62, %v499_v60 }
  0xf7   :  { %v502_v0 = vpop.f32.mrf.mxu1  ;;  %v481_v1 = vpop.f32.mrf.mxu0 }
  0xf8   :  { %v283_v12 = vadd.f32 %v501_v9, %v243_v8 }
  0xf9   :  { %v503_v2 = vpop.f32.mrf.mxu1 }
  0xfb   :  { %v362_v3 = vpop.f32.mrf.mxu1 }
  0xfd   :  { %v542_v55 = vpop.f32.mrf.mxu1 }
  0xff   :  { %v365_v4 = vpop.f32.mrf.mxu1 }
 0x101   :  { %v543_v5 = vpop.f32.mrf.mxu1 }
 0x111   :  { %v521_v10 = vpop.f32.mrf.mxu0 }
 0x113   :  { %v522_v11 = vpop.f32.mrf.mxu0 }
 0x114   :  { %v523_v13 = vadd.f32 %v522_v11, %v521_v10 }
 0x115   :  { %v524_v14 = vpop.f32.mrf.mxu0 }
 0x116   :  { %v323_v15 = vadd.f32 %v523_v13, %v283_v12 }
 0x117   :  { %v525_v16 = vpop.f32.mrf.mxu0 }
 0x118   :  { %v363_v17 = vadd.f32 %v362_v3, %v323_v15 }
 0x11a   :  { %v368_v18 = vmax.f32 %v363_v17, 0.0 }
 0x11c   :  { %v393_v19 = vpack.c.bf16 %v368_v18, %v368_v18 }
 0x11e   :  { %561 = vmatmul.mubr.bf16.vlgmr.msra.gmra.mxu1 %v393_v19 }
 0x1de   :  { %v435_v21 = vpop.f32.mrf.mxu1 }
 0x1df   :  { %v436_v22 = vadd.f32 %v460_v20, %v435_v21 }
 0x1e0   :  { %v562_v23 = vpop.f32.mrf.mxu1 }
 0x1e1   :  { %442 = vst.msk [vmem:[#allocation5] sm:$0xff] %vm441_vm2, %v436_v22 }
 0x1e2   :  { %v438_v24 = vpop.f32.mrf.mxu1 }
 0x1e3   :  { %601 = shalt.err (!%p598_p9)
}
 0x1e4   :  { %452 = dma.vmem_to_hbm [thread:$0]  %s450_s21, 128, %s749_s5, [#allocation4]   ;;  %v563_v25 = vpop.f32.mrf.mxu1 }
 0x1e5   :  { %612 = dma.done.wait [#allocation4], 128  }
 0x1e6   :  { %613 = vsyncadd [#allocation4], 4294967168 }
 0x1e7   :  { %456 = vsyncpa [#allocation3], 1 }
 0x1e8   :  { %457 = vsyncpa [#allocation4], 1 }

</bundles_post_ra>
